<compile_context>
chip_gen: v7x
topology: tpu7x:2x2x1
jax: 0.10.0
libtpu: 0.0.40
codegen_flags: <defaults>
</compile_context>

<pallas_src>
import functools

import jax
import jax.numpy as jnp
from jax.experimental import pallas as pl
from jax.experimental.pallas import tpu as pltpu


def _conv_in_relu_kernel(p_ref, w_ref, o_ref, s1_ref, s2_ref, *,
                         eps, hw_valid, hw_tile):
    """Grid = (batch n ["parallel"], hw tile j ["arbitrary"]).

    p_ref : (KKC, hw_tile)       im2col patches for this (n, j) tile (bf16 or f32)
    w_ref : (Cout, KKC)          conv weight, tap-major / channel-minor
    o_ref : (Cout, HW_pad)       resident output block for sample n (same block for all j)
    s1_ref, s2_ref : (Cout, 1)   f32 VMEM scratch: running sum / sum-of-squares
    """
    j = pl.program_id(1)
    nj = pl.num_programs(1)

    @pl.when(j == 0)
    def _():
        s1_ref[...] = jnp.zeros_like(s1_ref)
        s2_ref[...] = jnp.zeros_like(s2_ref)

    # Conv2d tile as one MXU contraction: (Cout, KKC) @ (KKC, hw_tile) -> f32 acc.
    acc = jax.lax.dot_general(
        w_ref[...], p_ref[...],
        dimension_numbers=(((1,), (0,)), ((), ())),
        preferred_element_type=jnp.float32)

    # InstanceNorm2d stats (per-channel over H*W), one pass.
    # Zero-padded HW lanes contribute exactly 0 to both sums (no bias term).
    s1_ref[...] += jnp.sum(acc, axis=1, keepdims=True)
    s2_ref[...] += jnp.sum(acc * acc, axis=1, keepdims=True)

    # Stash the un-normalized conv tile in the resident output block (dense, 128-aligned).
    start = pl.multiple_of(j * hw_tile, 128)
    o_ref[:, pl.ds(start, hw_tile)] = acc.astype(o_ref.dtype)

    @pl.when(j == nj - 1)
    def _():
        inv_hw = jnp.float32(1.0 / hw_valid)
        mean = s1_ref[...] * inv_hw
        # Clamp: E[x^2] - mean^2 can round slightly negative -> rsqrt NaN otherwise.
        var = jnp.maximum(s2_ref[...] * inv_hw - mean * mean, 0.0)
        inv = jax.lax.rsqrt(var + eps)
        y = (o_ref[...].astype(jnp.float32) - mean) * inv    # InstanceNorm (affine=False)
        o_ref[...] = jnp.maximum(y, 0.0).astype(o_ref.dtype)  # ReLU


def relu_ins_conv2d(x_nchw, weight, bias=None, *, stride, padding, eps=1e-5,
                    compute_dtype=jnp.bfloat16, max_hw_tile=2048):
    """ReflectionPad2d -> Conv2d(stride, bias) -> InstanceNorm2d(affine=False) -> ReLU.

    weight: PyTorch Conv2d layout (Cout, Cin, KH, KW); x: NCHW; returns NCHW.
    The conv bias is accepted for API parity but NOT used: a per-channel constant added
    before InstanceNorm2d(affine=False) is exactly cancelled by the mean subtraction.
    """
    N, Cin, IH, IW = x_nchw.shape
    Cout, Cin_w, KH, KW = weight.shape
    assert Cin == Cin_w
    assert padding < IH and padding < IW, "ReflectionPad2d requires padding < H, W"
    s = int(stride)
    del bias  # mathematically a no-op under InstanceNorm2d(affine=False)

    # ReflectionPad2d(padding)  (jnp 'reflect' == PyTorch: edge not repeated)
    xp = jnp.pad(x_nchw, ((0, 0), (0, 0), (padding, padding), (padding, padding)),
                 mode='reflect')
    Hp, Wp = IH + 2 * padding, IW + 2 * padding
    OH = (Hp - KH) // s + 1
    OW = (Wp - KW) // s + 1
    HW = OH * OW
    KKC = KH * KW * Cin

    # Pad the flattened HW lane axis up to a multiple of 128 so every store is an
    # unmasked dense vst; padded patch columns are zero => conv output there is 0.
    HW_pad = ((HW + 127) // 128) * 128

    # HW tile: largest multiple-of-128 divisor of HW_pad that fits the budget.
    m = HW_pad // 128
    d_best = 1
    for d in range(1, m + 1):
        if m % d == 0 and d * 128 <= max_hw_tile:
            d_best = d
    hw_tile = d_best * 128
    num_hw_tiles = HW_pad // hw_tile

    # im2col patches (single XLA gather pass; handles any stride).
    # P[n, (kh*KW+kw)*Cin + ci, oh*OW + ow] = xp[n, ci, s*oh + kh, s*ow + kw]
    # TODO(synk): at production Cin, replace with in-kernel tap matmuls on a padded
    # input slab to avoid writing/reading the 9x-inflated patch tensor through HBM.
    cols = []
    for kh in range(KH):
        for kw in range(KW):
            cols.append(xp[:, :, kh:kh + s * (OH - 1) + 1:s, kw:kw + s * (OW - 1) + 1:s])
    P = jnp.stack(cols, axis=1).reshape(N, KKC, HW)
    if HW_pad != HW:
        P = jnp.pad(P, ((0, 0), (0, 0), (0, HW_pad - HW)))
    P = P.astype(compute_dtype)

    # Weight as (Cout, KKC) with the same (kh, kw, ci) ordering.
    Wm = jnp.transpose(weight, (0, 2, 3, 1)).reshape(Cout, KKC).astype(compute_dtype)

    kernel = functools.partial(_conv_in_relu_kernel, eps=eps,
                               hw_valid=HW, hw_tile=hw_tile)

    # VMEM budget: double-buffered patch tile + resident weight + resident output block.
    cbytes = jnp.dtype(compute_dtype).itemsize
    obytes = jnp.dtype(x_nchw.dtype).itemsize
    need = (2 * KKC * hw_tile * cbytes
            + Cout * KKC * cbytes
            + Cout * HW_pad * obytes
            + 2 * Cout * 4)
    vmem_limit = int(min(64 * 2 ** 20, max(32 * 2 ** 20, 4 * need)))

    out_flat = pl.pallas_call(
        kernel,
        out_shape=jax.ShapeDtypeStruct((N, Cout, HW_pad), x_nchw.dtype),
        grid=(N, num_hw_tiles),
        in_specs=[
            pl.BlockSpec((pl.Squeezed(), KKC, hw_tile), lambda n, j: (n, 0, j)),
            pl.BlockSpec((Cout, KKC), lambda n, j: (0, 0)),
        ],
        out_specs=pl.BlockSpec((pl.Squeezed(), Cout, HW_pad), lambda n, j: (n, 0, 0)),
        scratch_shapes=[
            pltpu.VMEM((Cout, 1), jnp.float32),
            pltpu.VMEM((Cout, 1), jnp.float32),
        ],
        compiler_params=pltpu.CompilerParams(
            dimension_semantics=("parallel", "arbitrary"),
            vmem_limit_bytes=vmem_limit),
    )(P, Wm)

    # Drop the HW lane padding and reshape back to NCHW (cheap contiguous ops).
    return out_flat[:, :, :HW].reshape(N, Cout, OH, OW)


def _reference(x_nchw, weight, bias, *, stride, padding, eps=1e-5):
    """Pure-JAX reference: reflect pad -> conv (WITH bias) -> instance norm -> relu."""
    xp = jnp.pad(x_nchw, ((0, 0), (0, 0), (padding, padding), (padding, padding)),
                 mode='reflect')
    y = jax.lax.conv_general_dilated(
        xp, weight, window_strides=(stride, stride), padding='VALID',
        dimension_numbers=('NCHW', 'OIHW', 'NCHW'))
    y = y + bias.reshape(1, -1, 1, 1)
    mean = jnp.mean(y, axis=(2, 3), keepdims=True)
    var = jnp.mean((y - mean) ** 2, axis=(2, 3), keepdims=True)
    yn = (y - mean) * jax.lax.rsqrt(var + eps)
    return jnp.maximum(yn, 0.0)


if __name__ == "__main__":
    key = jax.random.PRNGKey(0)

    def run_case(case_key, *, N, n_in, n_out, ksize, stride, padding, H, W,
                 compute_dtype, max_hw_tile=2048, atol=2e-3, rtol=2e-3):
        kx, kw, kb = jax.random.split(case_key, 3)
        x = jax.random.normal(kx, (N, n_in, H, W), jnp.float32)
        # gaussian_weights_init: Conv2d weight ~ N(0, 0.02); small bias init
        weight = 0.02 * jax.random.normal(kw, (n_out, n_in, ksize, ksize), jnp.float32)
        bias = 0.05 * jax.random.normal(kb, (n_out,), jnp.float32)

        out = relu_ins_conv2d(x, weight, bias, stride=stride, padding=padding,
                              compute_dtype=compute_dtype, max_hw_tile=max_hw_tile)
        out = jax.block_until_ready(out)
        ref = jax.block_until_ready(
            _reference(x, weight, bias, stride=stride, padding=padding))

        OH = (H + 2 * padding - ksize) // stride + 1
        OW = (W + 2 * padding - ksize) // stride + 1
        assert out.shape == (N, n_out, OH, OW), out.shape
        err = float(jnp.max(jnp.abs(out - ref)))
        assert jnp.allclose(out, ref, atol=atol, rtol=rtol), err

    k1, k2, k3, k4 = jax.random.split(key, 4)
    # f32 path, single HW tile (HW=256): tight-tolerance exact-semantics check
    # (also proves the dropped conv bias is a no-op: reference uses the bias).
    run_case(k1, N=2, n_in=4, n_out=8, ksize=3, stride=1, padding=1, H=16, W=16,
             compute_dtype=jnp.float32, atol=2e-3, rtol=2e-3)
    # bf16 patches/weights (production byte-saving path), two 128-lane HW tiles
    # (exercises the scratch s1/s2 accumulation + pl.when finalize path).
    run_case(k2, N=2, n_in=4, n_out=8, ksize=3, stride=1, padding=1, H=16, W=16,
             compute_dtype=jnp.bfloat16, max_hw_tile=128, atol=5e-2, rtol=5e-2)
    # stride-2 downsampling conv: HW=64 padded to 128 lanes (dense stores), bf16.
    run_case(k3, N=2, n_in=4, n_out=8, ksize=3, stride=2, padding=1, H=16, W=16,
             compute_dtype=jnp.bfloat16, atol=5e-2, rtol=5e-2)
    # stride-2, f32, tight tolerance: checks HW-padding + real-HW stats divisor.
    run_case(k4, N=2, n_in=4, n_out=8, ksize=3, stride=2, padding=1, H=16, W=16,
             compute_dtype=jnp.float32, atol=2e-3, rtol=2e-3)
    print("KERNEL_OK")
</pallas_src>

<mosaic_0001>
module attributes {stable_mosaic.version = 11 : i64} {
  func.func @_conv_in_relu_kernel(%arg0: i32, %arg1: i32, %arg2: memref<1x36x256xf32, #tpu.memory_space<vmem>>, %arg3: memref<8x36xf32, #tpu.memory_space<vmem>>, %arg4: memref<1x8x256xf32, #tpu.memory_space<vmem>>, %arg5: memref<8x1xf32, #tpu.memory_space<vmem>>, %arg6: memref<8x1xf32, #tpu.memory_space<vmem>>) attributes {dimension_semantics = [#tpu.dimension_semantics<parallel>, #tpu.dimension_semantics<arbitrary>], iteration_bounds = array<i64: 2, 1>, scalar_prefetch = 0 : i64, scratch_operands = 2 : i64, tpu.core_type = #tpu.core_type<tc>, window_params = [{transform_indices = @transform_0, window_bounds = array<i64: 1, 36, 256>}, {pipeline_mode = #tpu.pipeline_mode<synchronous>, transform_indices = @transform_1, window_bounds = array<i64: 8, 36>}, {transform_indices = @transform_2, window_bounds = array<i64: 1, 8, 256>}]} {
    %c0_i32 = arith.constant 0 : i32
    %0 = arith.cmpi eq, %arg1, %c0_i32 : i32
    %1 = arith.extui %0 : i1 to i32
    %c0_i32_0 = arith.constant 0 : i32
    %2 = arith.cmpi ne, %1, %c0_i32_0 : i32
    scf.if %2 {
      %cst_19 = arith.constant 0.000000e+00 : f32
      %27 = vector.broadcast %cst_19 : f32 to vector<8x1xf32>
      %c0_20 = arith.constant 0 : index
      %c0_21 = arith.constant 0 : index
      %28 = vector.load %arg5[%c0_20, %c0_21] : memref<8x1xf32, #tpu.memory_space<vmem>>, vector<8x1xf32>
      tpu.vector_store %arg5[%c0_20, %c0_21], %27 {strides = array<i32>} : memref<8x1xf32, #tpu.memory_space<vmem>>, vector<8x1xf32>,
      %cst_22 = arith.constant 0.000000e+00 : f32
      %29 = vector.broadcast %cst_22 : f32 to vector<8x1xf32>
      %c0_23 = arith.constant 0 : index
      %c0_24 = arith.constant 0 : index
      %30 = vector.load %arg6[%c0_23, %c0_24] : memref<8x1xf32, #tpu.memory_space<vmem>>, vector<8x1xf32>
      tpu.vector_store %arg6[%c0_23, %c0_24], %29 {strides = array<i32>} : memref<8x1xf32, #tpu.memory_space<vmem>>, vector<8x1xf32>,
    } else {
    }
    %c0 = arith.constant 0 : index
    %c0_1 = arith.constant 0 : index
    %3 = vector.load %arg3[%c0, %c0_1] : memref<8x36xf32, #tpu.memory_space<vmem>>, vector<8x36xf32>
    %c0_2 = arith.constant 0 : index
    %c0_3 = arith.constant 0 : index
    %c0_4 = arith.constant 0 : index
    %4 = vector.load %arg2[%c0_2, %c0_3, %c0_4] : memref<1x36x256xf32, #tpu.memory_space<vmem>>, vector<1x36x256xf32>
    %5 = vector.shape_cast %4 : vector<1x36x256xf32> to vector<36x256xf32>
    %cst = arith.constant dense<0.000000e+00> : vector<8x256xf32>
    %6 = tpu.matmul %3, %5, %cst {dimension_numbers = #tpu.dot_dimension_numbers<[1], [0], [0], [1], [0, 0, 1, 1], [], []>} : vector<8x36xf32>, vector<36x256xf32>, vector<8x256xf32> -> vector<8x256xf32>
    %c0_5 = arith.constant 0 : index
    %c0_6 = arith.constant 0 : index
    %7 = vector.load %arg5[%c0_5, %c0_6] : memref<8x1xf32, #tpu.memory_space<vmem>>, vector<8x1xf32>
    %cst_7 = arith.constant dense<0.000000e+00> : vector<8xf32>
    %8 = vector.multi_reduction <add>, %6, %cst_7 [1] : vector<8x256xf32> to vector<8xf32>
    %9 = vector.shape_cast %8 : vector<8xf32> to vector<8x1xf32>
    %10 = arith.addf %7, %9 : vector<8x1xf32>
    %c0_8 = arith.constant 0 : index
    %c0_9 = arith.constant 0 : index
    %11 = vector.load %arg5[%c0_8, %c0_9] : memref<8x1xf32, #tpu.memory_space<vmem>>, vector<8x1xf32>
    tpu.vector_store %arg5[%c0_8, %c0_9], %10 {strides = array<i32>} : memref<8x1xf32, #tpu.memory_space<vmem>>, vector<8x1xf32>,
    %c0_10 = arith.constant 0 : index
    %c0_11 = arith.constant 0 : index
    %12 = vector.load %arg6[%c0_10, %c0_11] : memref<8x1xf32, #tpu.memory_space<vmem>>, vector<8x1xf32>
    %13 = arith.mulf %6, %6 : vector<8x256xf32>
    %cst_12 = arith.constant dense<0.000000e+00> : vector<8xf32>
    %14 = vector.multi_reduction <add>, %13, %cst_12 [1] : vector<8x256xf32> to vector<8xf32>
    %15 = vector.shape_cast %14 : vector<8xf32> to vector<8x1xf32>
    %16 = arith.addf %12, %15 : vector<8x1xf32>
    %c0_13 = arith.constant 0 : index
    %c0_14 = arith.constant 0 : index
    %17 = vector.load %arg6[%c0_13, %c0_14] : memref<8x1xf32, #tpu.memory_space<vmem>>, vector<8x1xf32>
    tpu.vector_store %arg6[%c0_13, %c0_14], %16 {strides = array<i32>} : memref<8x1xf32, #tpu.memory_space<vmem>>, vector<8x1xf32>,
    %c256_i32 = arith.constant 256 : i32
    %18 = arith.muli %arg1, %c256_i32 : i32
    %19 = tpu.assume_multiple %18, 128 : i32
    %c0_15 = arith.constant 0 : index
    %c0_16 = arith.constant 0 : index
    %20 = arith.index_cast %19 : i32 to index
    %21 = vector.load %arg4[%c0_15, %c0_16, %20] : memref<1x8x256xf32, #tpu.memory_space<vmem>>, vector<1x8x256xf32>
    %22 = vector.shape_cast %21 : vector<1x8x256xf32> to vector<8x256xf32>
    %23 = vector.shape_cast %6 : vector<8x256xf32> to vector<1x8x256xf32>
    tpu.vector_store %arg4[%c0_15, %c0_16, %20], %23 {strides = array<i32>} : memref<1x8x256xf32, #tpu.memory_space<vmem>>, vector<1x8x256xf32>,
    %c0_i32_17 = arith.constant 0 : i32
    %24 = arith.cmpi eq, %arg1, %c0_i32_17 : i32
    %25 = arith.extui %24 : i1 to i32
    %c0_i32_18 = arith.constant 0 : i32
    %26 = arith.cmpi ne, %25, %c0_i32_18 : i32
    scf.if %26 {
      %c0_19 = arith.constant 0 : index
      %c0_20 = arith.constant 0 : index
      %27 = vector.load %arg5[%c0_19, %c0_20] : memref<8x1xf32, #tpu.memory_space<vmem>>, vector<8x1xf32>
      %cst_21 = arith.constant 3.906250e-03 : f32
      %28 = vector.broadcast %cst_21 : f32 to vector<8x1xf32>
      %29 = arith.mulf %27, %28 : vector<8x1xf32>
      %c0_22 = arith.constant 0 : index
      %c0_23 = arith.constant 0 : index
      %30 = vector.load %arg6[%c0_22, %c0_23] : memref<8x1xf32, #tpu.memory_space<vmem>>, vector<8x1xf32>
      %cst_24 = arith.constant 3.906250e-03 : f32
      %31 = vector.broadcast %cst_24 : f32 to vector<8x1xf32>
      %32 = arith.mulf %30, %31 : vector<8x1xf32>
      %33 = arith.mulf %29, %29 : vector<8x1xf32>
      %34 = arith.subf %32, %33 : vector<8x1xf32>
      %cst_25 = arith.constant 0.000000e+00 : f32
      %35 = vector.broadcast %cst_25 : f32 to vector<8x1xf32>
      %36 = arith.maximumf %34, %35 : vector<8x1xf32>
      %cst_26 = arith.constant 9.99999974E-6 : f32
      %37 = vector.broadcast %cst_26 : f32 to vector<8x1xf32>
      %38 = arith.addf %36, %37 : vector<8x1xf32>
      %39 = math.rsqrt %38 : vector<8x1xf32>
      %c0_27 = arith.constant 0 : index
      %c0_28 = arith.constant 0 : index
      %c0_29 = arith.constant 0 : index
      %40 = vector.load %arg4[%c0_27, %c0_28, %c0_29] : memref<1x8x256xf32, #tpu.memory_space<vmem>>, vector<1x8x256xf32>
      %41 = vector.shape_cast %40 : vector<1x8x256xf32> to vector<8x256xf32>
      %42 = vector.broadcast %29 : vector<8x1xf32> to vector<8x256xf32>
      %43 = arith.subf %41, %42 : vector<8x256xf32>
      %44 = vector.broadcast %39 : vector<8x1xf32> to vector<8x256xf32>
      %45 = arith.mulf %43, %44 : vector<8x256xf32>
      %cst_30 = arith.constant 0.000000e+00 : f32
      %46 = vector.broadcast %cst_30 : f32 to vector<8x256xf32>
      %47 = arith.maximumf %45, %46 : vector<8x256xf32>
      %c0_31 = arith.constant 0 : index
      %c0_32 = arith.constant 0 : index
      %c0_33 = arith.constant 0 : index
      %48 = vector.load %arg4[%c0_31, %c0_32, %c0_33] : memref<1x8x256xf32, #tpu.memory_space<vmem>>, vector<1x8x256xf32>
      %49 = vector.shape_cast %48 : vector<1x8x256xf32> to vector<8x256xf32>
      %50 = vector.shape_cast %47 : vector<8x256xf32> to vector<1x8x256xf32>
      tpu.vector_store %arg4[%c0_31, %c0_32, %c0_33], %50 {strides = array<i32>} : memref<1x8x256xf32, #tpu.memory_space<vmem>>, vector<1x8x256xf32>,
    } else {
    }
    return
  }
  func.func @transform_0(%arg0: i32, %arg1: i32) -> (i32, i32, i32) {
    %c0_i32 = arith.constant 0 : i32
    %c0_i32_0 = arith.constant 0 : i32
    return %arg0, %c0_i32, %arg1 : i32, i32, i32
  }
  func.func @transform_1(%arg0: i32, %arg1: i32) -> (i32, i32) {
    %c0_i32 = arith.constant 0 : i32
    %c0_i32_0 = arith.constant 0 : i32
    %c0_i32_1 = arith.constant 0 : i32
    return %c0_i32, %c0_i32_0 : i32, i32
  }
  func.func @transform_2(%arg0: i32, %arg1: i32) -> (i32, i32, i32) {
    %c0_i32 = arith.constant 0 : i32
    %c0_i32_0 = arith.constant 0 : i32
    %c0_i32_1 = arith.constant 0 : i32
    return %arg0, %c0_i32, %c0_i32_0 : i32, i32, i32
  }
}

</mosaic_0001>

<bundles_post_ra>
// kernel: tpu_custom_call.1
= control target key start
LH: loop header
LB: loop body
LE: loop exit
PB: predicated region body
PF: predicated region fallthrough
CT: control target
= control target key end

     0   :  { %7 = vsyncpa [#allocation5], 0  ;;  %s717_s0 = inlined_call_operand.vmem [shape: f32[2,36,256], index: 0, kind: input, shape index: {}]   ;;  %s718_s1 = inlined_call_operand.vmem [shape: f32[8,36], index: 1, kind: input, shape index: {}]   ;;  %s719_s2 = inlined_call_operand.hbm [shape: f32[2,8,256], index: 2, kind: output, shape index: {}]  }
   0x1   :  { %9 = vsyncpa [#allocation5 + $0x1], 0  ;;  %s598_s9 = smov 0   ;;  %s600_s10 = smov 0  }
   0x2   :  { %s602_s11 = smov 0   ;;  %s604_s12 = smov 0  }
   0x3   :  { %s606_s13 = smov 0   ;;  %s608_s14 = smov 0  }
   0x4 LB: > { %s414_s15 = sadd.s32 4294967295, %s578_s14   ;;  %s415_s16 = sadd.s32 4294967294, %s578_s14   ;;  %s578_s14 = sphi %s608_s14, %s15_s14   ;;  %s574_s13 = sphi %s606_s13, %s726_s13   ;;  %s570_s12 = sphi %s604_s12, %s725_s12   ;;  %s566_s11 = sphi %s602_s11, %s724_s11   ;;  %s562_s10 = sphi %s600_s10, %s723_s10   ;;  %s558_s9 = sphi %s598_s9, %s722_s9  }
   0x5   : > { %s27_s17 = sadd.s32 1, %s574_s13  ;;  %s83_s18 = sadd.s32 1, %s566_s11 }
   0x6   : > { %p29_p0 = scmp.ge.s32.totalorder %s27_s17, 2  ;;  %p93_p1 = scmp.ne.s32.totalorder %s566_s11, %s562_s10 }
   0x7   : > { %p94_p2 = scmp.eq.s32.totalorder %s414_s15, 1  ;;  %p99_p3 = scmp.ne.s32.totalorder %s562_s10, %s558_s9 }
   0x8   : > { %s728_s17 = smov (%p29_p0, %s27_s17), 0  ;;  %p100_p5 = scmp.eq.s32.totalorder %s415_s16, 1 }
   0x9   : > { %p638_p4 = por %p94_p2, %p93_p1  ;;  %s80_s20 = ssub.s32 %s574_s13, %s728_s17 }
   0xa   : > { %p418_p6 = scmp.ge.s32.totalorder %s578_s14, 1  ;;  %p81_p7 = scmp.eq.s32.totalorder %s80_s20, 0 }
   0xb   : > { %p645_p8 = por %p100_p5, %p99_p3  ;;  %p134_p9 = scmp.lt.s32.totalorder %s578_s14, 3 }
   0xc   : > { %s651_s22 = scalar_select %p81_p7, %s566_s11, %s83_s18  }
   0xd   : > { %p135_p10 = pnand %p418_p6, %p134_p9 }
   0xe   : > { %p161_p11 = scmp.lt.s32.totalorder (!%p135_p10), %s570_s12, 1  ;;  %vm174_vm0 = vcmask (!%p135_p10), 7168   ;;  %v580_v0 = vmov (!%p135_p10), 0.0   ;;  %vm192_vm1 = vcmask (!%p135_p10), 1043456   ;;  %v177_v15 = vld [vmem:[%s718_s1] sm:$0xff] (!%p135_p10)  ;;  %vm188_vm2 = vcmask (!%p135_p10), 293888  }
   0xf   : > { %138 = sbr.rel (%p135_p10) target bundleno = 576 (0x240), region = 28  ;;  %175 = vst.msk [vmem:[#allocation2] sm:$0xff] (!%p135_p10), %vm174_vm0, %v580_v0  ;;  %176 = vst.msk [vmem:[#allocation3] sm:$0xff] (!%p135_p10), %vm174_vm0, %v580_v0  ;;  %263 = vmatprep.mubr.f32.mxu0 (!%p135_p10), %v580_v0  ;;  %v581_v22 = vmov (!%p135_p10), 0   ;;  %s157_s30 = sand.u32 (!%p135_p10), 1, %s562_s10  }
  0x10   : > { %496 = vset.pattern.permute.xlu1 (!%p135_p10), %v581_v22  ;;  %497 = vset.pattern.permute.xlu0 (!%p135_p10), %v581_v22  ;;  %s419_s3 = sshll.u32 (!%p135_p10), %s157_s30, 4  ;;  %s429_s4 = sshll.u32 (!%p135_p10), %s570_s12, 8 }
  0x11   : > { %s159_s5 = scalar_lea.vmem (!%p135_p10), [#allocation4], %s419_s3  ;;  %s670_s15 = scalar_lea.hbm (!%p135_p10), %s719_s2, %s429_s4 }
  0x12   : > { %s339_s6 = sshll.u32 (!%p135_p10), %s159_s5, 4  ;;  %s325_s16 = scalar_lea.sflag (!%p135_p10), [#allocation5], %s157_s30  ;;  %s672_s6 = int_to_ptr.vmem [resolvable:$true] %s339_s6 }
  0x13   : > { %s582_s18 = smov (!%p135_p10), [#allocation4]  }
  0x14   : > { %s504_s20 = sshll.u32 (!%p135_p10), %s582_s18, 4  ;;  %s505_s20 = int_to_ptr.vmem [resolvable:$false] %s504_s20 }
  0x15   : > { %p507_p1 = scmp.lt.s32.totalorder (!%p135_p10), %s672_s6, %s505_s20 }
  0x16   : > { %s162_s23 = scalar_select %p161_p11, %s570_s12, 1  ;;  %v270_v23 = vld [vmem:[#allocation2] sm:$0xff]  ;;  %v277_v26 = vld [vmem:[#allocation3] sm:$0xff] }
  0x17   : > { %s500_s12 = scalar_lea.vmem %s672_s6, 256 }
  0x18   : > { %s438_s24 = smul.u32 80, %s162_s23  ;;  %p501_p12 = scmp.ne.s32.totalorder %s672_s6, %s500_s12 }
  0x19   : > { %s506_s23 = scalar_lea.vmem %s505_s20, 512 }
  0x1a   : > { %s168_s27 = scalar_lea.vmem %s717_s0, %s438_s24  ;;  %p502_p13 = pnand %p501_p12, %p638_p4 }
  0x1b   : > { %v179_v1 = vld [vmem:[%s168_s27 + $0x8] sm:$0xff]  ;;  %v181_v2 = vld [vmem:[%s168_s27 + $0x18] sm:$0xff]  ;;  %v178_v3 = vld [vmem:[%s168_s27] sm:$0xff]  ;;  %p508_p2 = scmp.lt.s32.totalorder %s506_s23, %s500_s12 }
  0x1c   : > { %v430_v4 = vpack.c.bf16 %v181_v2, %v179_v1  ;;  %v180_v5 = vld [vmem:[%s168_s27 + $0x10] sm:$0xff]  ;;  %v183_v6 = vld [vmem:[%s168_s27 + $0x28] sm:$0xff]  ;;  %v185_v7 = vld [vmem:[%s168_s27 + $0x38] sm:$0xff]  ;;  %p503_p0 = pneg %p502_p13 }
  0x1d   : > { %v432_v8 = vpack.c.bf16 %v180_v5, %v178_v3  ;;  %v434_v9 = vpack.c.bf16 %v185_v7, %v183_v6  ;;  %v182_v10 = vld [vmem:[%s168_s27 + $0x20] sm:$0xff]  ;;  %v184_v11 = vld [vmem:[%s168_s27 + $0x30] sm:$0xff]  ;;  %v187_v13 = vld [vmem:[%s168_s27 + $0x48] sm:$0xf]  ;;  %p509_p3 = por %p508_p2, %p507_p1 }
  0x1e   : > { %431 = vmatprep.subr.bf16.mxu0 %v430_v4  ;;  %v436_v12 = vpack.c.bf16 %v184_v11, %v182_v10  ;;  %v186_v14 = vld [vmem:[%s168_s27 + $0x40] sm:$0xf] }
  0x1f   : > { %433 = vmatpush1.bf16.msra.mxu0 %v432_v8  ;;  %p510_p5 = pnand %p509_p3, %p503_p0 }
  0x20   : > { %435 = vmatprep.subr.bf16.mxu0 %v434_v9 }
  0x23   : > { %437 = vmatpush1.bf16.msra.mxu0 %v436_v12 }
  0x24   : > { %421 = vmatprep.subr.msk.mxu0 %vm192_vm1, %v187_v13 }
  0x27   : > { %422 = vmatpush1.msk.msra.mxu0 %vm192_vm1, %v186_v14 }
  0x28   : > { %423 = vmatmul.mubr.msk.f32.vlgmr.msra.gmra.mrb[0].mxu0 %vm188_vm2, %v177_v15 }
  0xfb   : > { %v265_v16 = vpop.f32.mrb[0].mxu0 }
  0xfc   : > { %v267_v17 = vpop.f32.mrb[1].mxu0  ;;  %v278_v18 = vmul.f32 %v265_v16, %v265_v16 }
  0xfd   : > { %v279_v19 = vmul.f32 %v267_v17, %v267_v17  ;;  %v271_v20 = vadd.f32 %v267_v17, %v265_v16 }
  0xff   : > { %272 = vadd.xlane.f32.xlu0 %v271_v20  ;;  %v280_v21 = vadd.f32 %v279_v19, %v278_v18 }
 0x103   : > { %281 = vadd.xlane.f32.xlu0 %v280_v21 }
 0x18c   : > { %v273_v24 = vpop.xlane.xlu0 %272 }
 0x18d   : > { %v274_v25 = vadd.f32 %v273_v24, %v270_v23 }
 0x18f   : > { %276 = vst.msk [vmem:[#allocation2] sm:$0xff] %vm174_vm0, %v274_v25 }
 0x190   : > { %v282_v27 = vpop.xlane.xlu0 %281 }
 0x191   : > { %v283_v28 = vadd.f32 %v282_v27, %v277_v26 }
 0x193   : > { %284 = vst.msk [vmem:[#allocation3] sm:$0xff] %vm174_vm0, %v283_v28 }
 0x196   : > { %v295_v29 = vld [vmem:[#allocation2] sm:$0xff] }
 0x197   : > { %v296_v30 = vmul.f32 0.00390625, %v295_v29 }
 0x199   : > { %308 = vperm.xlu1 %496, %v296_v30   ;;  %v299_v33 = vmul.f32 %v296_v30, %v296_v30 }
 0x19a   : > { %v297_v31 = vld [vmem:[#allocation3] sm:$0xff] }
 0x19b   : > { %v298_v32 = vmul.f32 0.00390625, %v297_v31 }
 0x19d   : > { %v300_v34 = vsub.f32 %v298_v32, %v299_v33 }
 0x19f   : > { %v301_v35 = vmax.f32 %v300_v34, 0.0 }
 0x1a1   : > { %v302_v36 = vadd.f32 1e-05, %v301_v35 }
 0x1a3   : > { %498 = vrsqrt.f32 %v302_v36 }
 0x1ad   : > { %v499_v37 = vpop.eup %498 }
 0x1ae   : > { %315 = vperm.xlu1 %496, %v499_v37  }
 0x218   : > { %v309_v38 = vpop.permute.xlu1 %308 }
 0x219   : > { %v311_v39 = vsub.f32 %v265_v16, %v309_v38  ;;  %v312_v40 = vsub.f32 %v267_v17, %v309_v38 }
 0x22d   : > { %v316_v41 = vpop.permute.xlu1 %315 }
 0x22e   : > { %v318_v42 = vmul.f32 %v316_v41, %v311_v39  ;;  %v319_v43 = vmul.f32 %v316_v41, %v312_v40 }
 0x230   : > { %v320_v44 = vmax.f32 %v318_v42, 0.0  ;;  %v321_v45 = vmax.f32 %v319_v43, 0.0 }
 0x232   : > { %322 = vst [vmem:[%s159_s5] sm:$0xff] %v320_v44  ;;  %323 = vst [vmem:[%s159_s5 + $0x8] sm:$0xff] %v321_v45 }
 0x233   : > { %513 = shalt.err (!%p510_p5)
}
 0x234   : > { %s514_s24 = scalar_lea.hbm %s670_s15, 256  ;;  %s518_s27 = scalar_lea.hbm %s719_s2, 512 }
 0x235   : > { %p515_p6 = scmp.ne.s32.totalorder %s670_s15, %s514_s24  ;;  %p519_p10 = scmp.lt.u32.totalorder %s670_s15, %s719_s2 }
 0x236   : > { %p520_p11 = scmp.lt.u32.totalorder %s518_s27, %s514_s24  ;;  %p522_p13 = scmp.lt.u32.totalorder %s514_s24, %s670_s15 }
 0x237   : > { %p516_p7 = pnand %p515_p6, %p638_p4 }
 0x238   : > { %p521_p12 = por %p520_p11, %p519_p10 }
 0x239   : > { %p517_p9 = pneg %p516_p7 }
 0x23a   : > { %p523_p0 = por %p522_p13, %p521_p12 }
 0x23c   : > { %p524_p1 = pnand %p523_p0, %p517_p9 }
 0x23e   : > { %527 = shalt.err (!%p524_p1)
}
 0x23f   : > { %439 = dma.vmem_to_hbm [thread:$0]  (%p638_p4), %s672_s6, 256, %s670_s15, %s325_s16  }
 0x240 PF: > { %p445_p2 = scmp.ge.s32.totalorder %s578_s14, 2  ;;  %s351_s30 = sand.u32 1, %s558_s9  }
 0x241   : > { %s352_s3 = scalar_lea.sflag [#allocation5], %s351_s30 }
 0x242   : > { %p442_p3 = pnand %p445_p2, %p645_p8 }
 0x244   : > { %553 = dma.done.wait (!%p442_p3), %s352_s3, 256  }
 0x245   : > { %555 = vsyncadd (!%p442_p3), %s352_s3, 4294967040  ;;  %s15_s14 = sadd.s32 1, %s578_s14   ;;  %s722_s9 = smov %s562_s10 }
 0x246   : > { %p12_p5 = scmp.ge.s32.totalorder %s15_s14, 4   ;;  %s723_s10 = smov %s566_s11 }
 0x247   : > { %s724_s11 = smov %s651_s22  ;;  %s725_s12 = smov %s574_s13 }
 0x248   : > { %s726_s13 = smov %s728_s17  ;;  %14 = sbr.rel (!%p12_p5) target bundleno = 4 (0x4), region = 72 }
 0x24f   :  { %357 = vsyncpa [#allocation5], 1 }
 0x250   :  { %359 = vsyncpa [#allocation5 + $0x1], 1 }

</bundles_post_ra>
